<compile_context>
chip_gen: v7x
topology: tpu7x:2x2x1
jax: 0.10.0
libtpu: 0.0.40
codegen_flags: <defaults>
</compile_context>

<pallas_src>
import jax
import jax.numpy as jnp
from jax.experimental import pallas as pl
from jax.experimental.pallas import tpu as pltpu

D_IN = 300        # fasttext sentence-vector size (fixed by TextEncoder(300, embed_size))
EMBED = 32        # embed_size of TextEncoder
EMBED_PAD = 128   # lane-padded output width (unmasked stores); sliced back to EMBED outside
EPS = 1e-12       # guards the L2 norm against all-zero rows (possible after ReLU)


def fasttext_head_kernel(x_ref, w_ref, b_ref, o_ref):
    # x_ref: (B, C, D_IN) per-caption sentence vectors; one block = whole array.
    pooled = jnp.mean(x_ref[...], axis=1)                       # 'mean' aggregation over captions
    h = jnp.maximum(pooled, 0.0)                                # TextEncoder.activation (ReLU)
    y = jnp.dot(h.astype(jnp.bfloat16), w_ref[...],             # bf16 inputs, f32 accumulate
                preferred_element_type=jnp.float32) + b_ref[...]          # (B, EMBED_PAD)
    # Padded columns of w/b are zero, so they contribute nothing to the norm.
    inv_norm = jax.lax.rsqrt(jnp.sum(y * y, axis=1, keepdims=True) + EPS)  # EUP rsqrt
    o_ref[...] = y * inv_norm


def fasttext_forward(caption_vecs, w_pad, b_pad):
    B = caption_vecs.shape[0]
    out = pl.pallas_call(
        fasttext_head_kernel,
        out_shape=jax.ShapeDtypeStruct((B, EMBED_PAD), jnp.float32),
        in_specs=[pl.BlockSpec(memory_space=pltpu.MemorySpace.VMEM)] * 3,
        out_specs=pl.BlockSpec(memory_space=pltpu.MemorySpace.VMEM),
    )(caption_vecs, w_pad, b_pad)
    return out[:, :EMBED]


def init_params(key):
    kw, kb = jax.random.split(key)
    # nn.Linear(300, EMBED): stored transposed as (300, EMBED) for a lane-dense matmul.
    bound = 1.0 / (D_IN ** 0.5)
    w = jax.random.uniform(kw, (D_IN, EMBED), jnp.float32, -bound, bound)
    b = jax.random.uniform(kb, (EMBED,), jnp.float32, -bound, bound)
    # Lane-padded copies handed to the kernel (weights in bf16, bias in f32).
    w_pad = jnp.zeros((D_IN, EMBED_PAD), jnp.bfloat16).at[:, :EMBED].set(w.astype(jnp.bfloat16))
    b_pad = jnp.zeros((1, EMBED_PAD), jnp.float32).at[:, :EMBED].set(b)
    return w, b, w_pad, b_pad


# ---------------- pure-JAX f32 reference (for correctness check) ----------------
def fasttext_forward_ref(caption_vecs, w, b):
    pooled = jnp.mean(caption_vecs, axis=1)
    h = jnp.maximum(pooled, 0.0)
    y = h @ w + b
    return y / jnp.sqrt(jnp.sum(y * y, axis=1, keepdims=True))


if __name__ == "__main__":
    key = jax.random.PRNGKey(0)
    pkey, dkey = jax.random.split(key)
    w, b, w_pad, b_pad = init_params(pkey)

    B, C = 2, 4   # batch of 2 caption-lists, 4 captions each
    # TODO(synk): stands in for fasttext.get_sentence_vector outputs (strings -> 300-d vectors).
    caption_vecs = jax.random.normal(dkey, (B, C, D_IN), jnp.float32)

    out = jax.block_until_ready(fasttext_forward(caption_vecs, w_pad, b_pad))
    ref = jax.block_until_ready(fasttext_forward_ref(caption_vecs, w, b))

    assert out.shape == (B, EMBED), out.shape
    assert bool(jnp.all(jnp.isfinite(out)))
    assert bool(jnp.allclose(out, ref, rtol=5e-2, atol=5e-2)), float(jnp.max(jnp.abs(out - ref)))
    print("KERNEL_OK")
</pallas_src>

<mosaic_0001>
module attributes {stable_mosaic.version = 11 : i64} {
  func.func @fasttext_head_kernel(%arg0: memref<2x4x300xf32, #tpu.memory_space<vmem>>, %arg1: memref<300x128xbf16, #tpu.memory_space<vmem>>, %arg2: memref<1x128xf32, #tpu.memory_space<vmem>>, %arg3: memref<2x128xf32, #tpu.memory_space<vmem>>) attributes {dimension_semantics = [], scalar_prefetch = 0 : i64, scratch_operands = 0 : i64, tpu.core_type = #tpu.core_type<tc>} {
    %c0 = arith.constant 0 : index
    %c0_0 = arith.constant 0 : index
    %c0_1 = arith.constant 0 : index
    %0 = vector.load %arg0[%c0, %c0_0, %c0_1] : memref<2x4x300xf32, #tpu.memory_space<vmem>>, vector<2x4x300xf32>
    %cst = arith.constant dense<0.000000e+00> : vector<2x300xf32>
    %1 = vector.multi_reduction <add>, %0, %cst [1] : vector<2x4x300xf32> to vector<2x300xf32>
    %cst_2 = arith.constant 4.000000e+00 : f32
    %2 = vector.broadcast %cst_2 : f32 to vector<2x300xf32>
    %3 = arith.divf %1, %2 : vector<2x300xf32>
    %cst_3 = arith.constant 0.000000e+00 : f32
    %4 = vector.broadcast %cst_3 : f32 to vector<2x300xf32>
    %5 = arith.maximumf %3, %4 : vector<2x300xf32>
    %6 = arith.truncf %5 : vector<2x300xf32> to vector<2x300xbf16>
    %c0_4 = arith.constant 0 : index
    %c0_5 = arith.constant 0 : index
    %7 = vector.load %arg1[%c0_4, %c0_5] : memref<300x128xbf16, #tpu.memory_space<vmem>>, vector<300x128xbf16>
    %cst_6 = arith.constant dense<0.000000e+00> : vector<2x128xf32>
    %8 = tpu.matmul %6, %7, %cst_6 {dimension_numbers = #tpu.dot_dimension_numbers<[1], [0], [0], [1], [0, 0, 1, 1], [], []>} : vector<2x300xbf16>, vector<300x128xbf16>, vector<2x128xf32> -> vector<2x128xf32>
    %c0_7 = arith.constant 0 : index
    %c0_8 = arith.constant 0 : index
    %9 = vector.load %arg2[%c0_7, %c0_8] : memref<1x128xf32, #tpu.memory_space<vmem>>, vector<1x128xf32>
    %10 = vector.broadcast %9 : vector<1x128xf32> to vector<2x128xf32>
    %11 = arith.addf %8, %10 : vector<2x128xf32>
    %12 = arith.mulf %11, %11 : vector<2x128xf32>
    %cst_9 = arith.constant dense<0.000000e+00> : vector<2xf32>
    %13 = vector.multi_reduction <add>, %12, %cst_9 [1] : vector<2x128xf32> to vector<2xf32>
    %14 = vector.shape_cast %13 : vector<2xf32> to vector<2x1xf32>
    %cst_10 = arith.constant 9.99999996E-13 : f32
    %15 = vector.broadcast %cst_10 : f32 to vector<2x1xf32>
    %16 = arith.addf %14, %15 : vector<2x1xf32>
    %17 = math.rsqrt %16 : vector<2x1xf32>
    %18 = vector.broadcast %17 : vector<2x1xf32> to vector<2x128xf32>
    %19 = arith.mulf %11, %18 : vector<2x128xf32>
    %c0_11 = arith.constant 0 : index
    %c0_12 = arith.constant 0 : index
    %20 = vector.load %arg3[%c0_11, %c0_12] : memref<2x128xf32, #tpu.memory_space<vmem>>, vector<2x128xf32>
    tpu.vector_store %arg3[%c0_11, %c0_12], %19 {strides = array<i32>} : memref<2x128xf32, #tpu.memory_space<vmem>>, vector<2x128xf32>,
    return
  }
}

</mosaic_0001>

<bundles_post_ra>
// kernel: tpu_custom_call.1
= control target key start
LH: loop header
LB: loop body
LE: loop exit
PB: predicated region body
PF: predicated region fallthrough
CT: control target
= control target key end

     0   :  { %8 = vsyncpa [#allocation3], 0  ;;  %s645_s0 = inlined_call_operand.hbm [shape: f32[2,4,300], index: 0, kind: input, shape index: {}]   ;;  %s646_s1 = inlined_call_operand.hbm [shape: bf16[300,128], index: 1, kind: input, shape index: {}]   ;;  %s647_s2 = inlined_call_operand.vmem [shape: f32[1,128], index: 2, kind: input, shape index: {}]   ;;  %s648_s3 = inlined_call_operand.hbm [shape: f32[2,128], index: 3, kind: output, shape index: {}]  }
   0x1   :  { %9 = vsyncpa [#allocation6], 0 }
   0x2   :  { %10 = vsyncpa [#allocation4], 0  ;;  %s570_s12 = smov [#allocation2]   ;;  %s498_s16 = scalar_lea.hbm %s645_s0, 384 }
   0x3   :  { %s16_s13 = sshll.u32 %s570_s12, 4  ;;  %p499_p0 = scmp.ne.s32.totalorder %s645_s0, %s498_s16  ;;  %s17_s13 = int_to_ptr.vmem [resolvable:$true] %s16_s13 }
   0x4   :  { %p502_p1 = scmp.lt.u32.totalorder %s498_s16, %s645_s0 }
   0x6   :  { %p504_p2 = pnand %p502_p1, %p499_p0 }
   0x8   :  { %507 = shalt.err (!%p504_p2)
}
   0x9   :  { %s508_s21 = scalar_lea.vmem %s17_s13, 384  ;;  %p513_p4 = scmp.lt.s32.totalorder %s17_s13, %s17_s13 }
   0xa   :  { %p509_p3 = scmp.ne.s32.totalorder %s17_s13, %s508_s21  ;;  %p514_p5 = scmp.lt.s32.totalorder %s508_s21, %s508_s21 }
   0xc   :  { %p515_p6 = por %p514_p5, %p513_p4 }
   0xe   :  { %p516_p7 = pnand %p515_p6, %p509_p3 }
  0x10   :  { %519 = shalt.err (!%p516_p7)
}
  0x11   :  { %s571_s22 = smov 192   ;;  %s572_s23 = smov 12  }
  0x12   :  { %22 = dma.hbm_to_vmem [thread:$0]  %s645_s0, 384, %s17_s13, [#allocation3], %s571_s22, %s571_s22, %s572_s23  }
  0x13   :  { %s573_s26 = smov [#allocation5]   ;;  %s520_s30 = scalar_lea.hbm %s646_s1, 2432 }
  0x14   :  { %s28_s27 = sshll.u32 %s573_s26, 4  ;;  %p521_p8 = scmp.ne.s32.totalorder %s646_s1, %s520_s30  ;;  %s29_s27 = int_to_ptr.vmem [resolvable:$true] %s28_s27 }
  0x15   :  { %p524_p9 = scmp.lt.u32.totalorder %s520_s30, %s646_s1 }
  0x17   :  { %p526_p10 = pnand %p524_p9, %p521_p8 }
  0x19   :  { %529 = shalt.err (!%p526_p10)
}
  0x1a   :  { %s530_s8 = scalar_lea.vmem %s29_s27, 2432  ;;  %p535_p12 = scmp.lt.s32.totalorder %s29_s27, %s29_s27 }
  0x1b   :  { %p531_p11 = scmp.ne.s32.totalorder %s29_s27, %s530_s8  ;;  %p536_p13 = scmp.lt.s32.totalorder %s530_s8, %s530_s8 }
  0x1d   :  { %p537_p0 = por %p536_p13, %p535_p12 }
  0x1f   :  { %p538_p1 = pnand %p537_p0, %p531_p11 }
  0x21   :  { %541 = shalt.err (!%p538_p1)
}
  0x22   :  { %s574_s0 = smov 64   ;;  %s575_s9 = smov 4  }
  0x23   :  { %34 = dma.hbm_to_vmem [thread:$0]  %s646_s1, 2432, %s29_s27, [#allocation6], %s574_s0, %s574_s0, %s575_s9  }
  0x24   :  { %564 = dma.done.wait [#allocation3], 384  }
  0x25   :  { %565 = vsyncadd [#allocation3], 4294966912 }
  0x26   :  { %566 = dma.done.wait [#allocation6], 2432  }
  0x27   :  { %567 = vsyncadd [#allocation6], 4294964864  ;;  %v576_v0 = vmov 0.0   ;;  %vm577_vm0 = vmmov 0   ;;  %v475_v1 = vld [vmem:[#allocation5 + $0x40] sm:$0xff]   ;;  %v477_v3 = vld [vmem:[#allocation5 + $0x48] sm:$0xff]  }
  0x28   :  { %456 = vmatprep.subr.bf16.mxu1 %v576_v0  ;;  %462 = vmatprep.mubr.msk.bf16.mxu1 %vm577_vm0, %v576_v0  ;;  %v476_v2 = vld [vmem:[#allocation5] sm:$0xff]   ;;  %v478_v4 = vld [vmem:[#allocation5 + $0x8] sm:$0xff]   ;;  %v479_v5 = vld [vmem:[#allocation5 + $0x50] sm:$0xff]   ;;  %vm54_vm1 = vcmask 1043456   ;;  %vm69_vm2 = vcmask 355328   ;;  %vm300_vm3 = vcmask 1045504  }
  0x29   :  { %430 = vmatprep.subr.bf16.mxu0 %v475_v1  ;;  %v480_v6 = vld [vmem:[#allocation5 + $0x10] sm:$0xff]   ;;  %v481_v7 = vld [vmem:[#allocation5 + $0x58] sm:$0xff]   ;;  %v483_v9 = vld [vmem:[#allocation5 + $0x60] sm:$0xff]   ;;  %vm174_vm4 = vcmask 1041409   ;;  %vm296_vm5 = vcmask 359424   ;;  %vm385_vm6 = vcmask 1041408  }
  0x2a   :  { %431 = vmatpush3.bf16.msra.mxu0 %v476_v2  ;;  %v482_v8 = vld [vmem:[#allocation5 + $0x18] sm:$0xff]   ;;  %v487_v10 = vld [vmem:[#allocation5 + $0x80] sm:$0xff]   ;;  %v490_v12 = vld [vmem:[#allocation5 + $0x88] sm:$0xff]   ;;  %s578_s13 = smov [#allocation7]  }
  0x2b   :  { %432 = vmatprep.subr.bf16.mxu0 %v477_v3  ;;  %v484_v11 = vld [vmem:[#allocation5 + $0x20] sm:$0xff]   ;;  %457 = vmatpush3.bf16.msra.mxu1 %v487_v10  ;;  %v485_v13 = vld [vmem:[#allocation5 + $0x68] sm:$0xff]   ;;  %v488_v15 = vld [vmem:[#allocation5 + $0x70] sm:$0xff]   ;;  %s399_s14 = sshll.u32 %s578_s13, 4  ;;  %s400_s14 = int_to_ptr.vmem [resolvable:$true] %s399_s14 }
  0x2c   :  { %458 = vmatprep.subr.bf16.mxu1 %v576_v0  ;;  %v486_v14 = vld [vmem:[#allocation5 + $0x28] sm:$0xff]   ;;  %v45_v17 = vld [vmem:[#allocation2 + $0x8] sm:$0xf]  ;;  %v46_v18 = vld [vmem:[#allocation2 + $0xc] sm:$0xff]  ;;  %s542_s15 = scalar_lea.vmem %s400_s14, 32  ;;  %p547_p3 = scmp.lt.s32.totalorder %s400_s14, %s400_s14 }
  0x2d   :  { %v44_v16 = vld [vmem:[#allocation2] sm:$0xff]  ;;  %v47_v19 = vld [vmem:[#allocation2 + $0x14] sm:$0xf]  ;;  %v51_v21 = vcombine.high %v46_v18, %v46_v18  ;;  %v70_v22 = vsel %vm69_vm2, %v45_v17, 0.0  ;;  %v495_v26 = vld [vmem:[#allocation5 + $0x90] sm:$0x3f]   ;;  %p543_p2 = scmp.ne.s32.totalorder %s400_s14, %s542_s15  ;;  %p548_p4 = scmp.lt.s32.totalorder %s542_s15, %s542_s15 }
  0x2e   :  { %433 = vmatpush3.bf16.msra.mxu0 %v478_v4  ;;  %v50_v20 = vcombine.high %v44_v16, %v44_v16  ;;  %v55_v23 = vsel %vm54_vm1, %v44_v16, 0.0  ;;  %v71_v24 = vrot.slane %v70_v22, 4  ;;  %v91_v25 = vsel %vm69_vm2, %v47_v19, 0.0  ;;  %v489_v35 = vld [vmem:[#allocation5 + $0x30] sm:$0xff]   ;;  %v491_v39 = vld [vmem:[#allocation5 + $0x78] sm:$0xff]  }
  0x2f   :  { %434 = vmatprep.subr.bf16.mxu0 %v479_v5  ;;  %459 = vmatpush3.bf16.msra.mxu1 %v490_v12  ;;  %v84_v28 = vsel %vm54_vm1, %v51_v21, 0.0  ;;  %v92_v29 = vrot.slane %v91_v25, 4  ;;  %v56_v30 = vrot.slane %v55_v23, 4  ;;  %v302_v34 = vsel %vm300_vm3, %v495_v26, 0  ;;  %v492_v50 = vld [vmem:[#allocation5 + $0x38] sm:$0xff]   ;;  %p549_p5 = por %p548_p4, %p547_p3 }
  0x30   :  { %460 = vmatprep.subr.bf16.mxu1 %v576_v0  ;;  %v62_v27 = vsel %vm54_vm1, %v50_v20, 0.0  ;;  %v72_v32 = vadd.f32 %v71_v24, %v70_v22  ;;  %v85_v33 = vrot.slane %v84_v28, 4  ;;  %v77_v38 = vsel %vm54_vm1, %v46_v18, 0.0 }
  0x31   :  { %v63_v31 = vrot.slane %v62_v27, 4  ;;  %v93_v36 = vadd.f32 %v92_v29, %v91_v25  ;;  %v57_v37 = vadd.f32 %v56_v30, %v55_v23  ;;  %v78_v43 = vrot.slane %v77_v38, 4  ;;  %p550_p6 = pnand %p549_p5, %p543_p2 }
  0x32   :  { %435 = vmatpush3.bf16.msra.mxu0 %v480_v6  ;;  %v73_v41 = vrot.slane %v72_v32, 2  ;;  %v86_v42 = vadd.f32 %v85_v33, %v84_v28 }
  0x33   :  { %436 = vmatprep.subr.bf16.mxu0 %v481_v7  ;;  %461 = vmatpush3.bf16.msra.mxu1 %v302_v34  ;;  %v64_v40 = vadd.f32 %v63_v31, %v62_v27  ;;  %v94_v44 = vrot.slane %v93_v36, 2  ;;  %v58_v45 = vrot.slane %v57_v37, 2  ;;  %v79_v49 = vadd.f32 %v78_v43, %v77_v38 }
  0x34   :  { %v74_v47 = vadd.f32 %v73_v41, %v72_v32  ;;  %v87_v48 = vrot.slane %v86_v42, 2  ;;  %v409_v41 = vld [vmem:[%s647_s2] ss:$0 sm:$0xff] }
  0x35   :  { %v65_v46 = vrot.slane %v64_v40, 2  ;;  %v95_v51 = vadd.f32 %v94_v44, %v93_v36  ;;  %v59_v52 = vadd.f32 %v58_v45, %v57_v37  ;;  %v80_v56 = vrot.slane %v79_v49, 2 }
  0x36   :  { %437 = vmatpush3.bf16.msra.mxu0 %v482_v8  ;;  %v75_v54 = vrot.slane %v74_v47, 1  ;;  %v88_v55 = vadd.f32 %v87_v48, %v86_v42 }
  0x37   :  { %438 = vmatprep.subr.bf16.mxu0 %v483_v9  ;;  %v66_v53 = vadd.f32 %v65_v46, %v64_v40  ;;  %v96_v57 = vrot.slane %v95_v51, 1  ;;  %v60_v58 = vrot.slane %v59_v52, 1  ;;  %v81_v62 = vadd.f32 %v80_v56, %v79_v49 }
  0x38   :  { %v76_v60 = vadd.f32 %v75_v54, %v74_v47  ;;  %v89_v61 = vrot.slane %v88_v55, 1 }
  0x39   :  { %v67_v59 = vrot.slane %v66_v53, 1  ;;  %v97_v63 = vadd.f32 %v96_v57, %v95_v51  ;;  %v61_v0 = vadd.f32 %v60_v58, %v59_v52  ;;  %v82_v4 = vrot.slane %v81_v62, 1 }
  0x3a   :  { %439 = vmatpush3.bf16.msra.mxu0 %v484_v11  ;;  %v90_v2 = vadd.f32 %v89_v61, %v88_v55  ;;  %v101_v3 = vmul.f32 0.25, %v76_v60 }
  0x3b   :  { %440 = vmatprep.subr.bf16.mxu0 %v485_v13  ;;  %v68_v1 = vadd.f32 %v67_v59, %v66_v53  ;;  %v104_v5 = vmul.f32 0.25, %v97_v63  ;;  %v99_v6 = vmul.f32 0.25, %v61_v0  ;;  %v83_v10 = vadd.f32 %v82_v4, %v81_v62 }
  0x3c   :  { %v103_v8 = vmul.f32 0.25, %v90_v2  ;;  %v107_v9 = vmax.f32 %v101_v3, 0.0 }
  0x3d   :  { %v100_v7 = vmul.f32 0.25, %v68_v1  ;;  %v110_v11 = vmax.f32 %v104_v5, 0.0  ;;  %v105_v12 = vmax.f32 %v99_v6, 0.0  ;;  %v102_v16 = vmul.f32 0.25, %v83_v10 }
  0x3e   :  { %441 = vmatpush3.bf16.msra.mxu0 %v486_v14  ;;  %v109_v14 = vmax.f32 %v103_v8, 0.0 }
  0x3f   :  { %442 = vmatprep.subr.bf16.mxu0 %v488_v15  ;;  %v106_v13 = vmax.f32 %v100_v7, 0.0  ;;  %v113_v15 = vpack.c.bf16 %v107_v9, %v107_v9  ;;  %v116_v17 = vpack.c.bf16 %v110_v11, %v110_v11  ;;  %v111_v18 = vpack.c.bf16 %v105_v12, %v105_v12 }
  0x40   :  { %v115_v20 = vpack.c.bf16 %v109_v14, %v109_v14  ;;  %v108_v22 = vmax.f32 %v102_v16, 0.0 }
  0x41   :  { %v112_v19 = vpack.c.bf16 %v106_v13, %v106_v13  ;;  %v170_v21 = vunpack.c.l.b16 %v113_v15  ;;  %v173_v23 = vunpack.c.l.b16 %v116_v17  ;;  %v168_v27 = vunpack.c.l.b16 %v111_v18 }
  0x42   :  { %443 = vmatpush3.bf16.msra.mxu0 %v489_v35  ;;  %v172_v25 = vunpack.c.l.b16 %v115_v20  ;;  %v114_v26 = vpack.c.bf16 %v108_v22, %v108_v22 }
  0x43   :  { %444 = vmatprep.subr.bf16.mxu0 %v491_v39  ;;  %v169_v24 = vunpack.c.l.b16 %v112_v19  ;;  %v177_v28 = vsel %vm174_vm4, %v173_v23, %v170_v21 }
  0x44   :  { %v180_v30 = vpack.c.b16 %v177_v28, %v177_v28  ;;  %v171_v31 = vunpack.c.l.b16 %v114_v26 }
  0x45   :  { %v176_v29 = vsel %vm174_vm4, %v172_v25, %v169_v24 }
  0x46   :  { %445 = vmatpush3.bf16.msra.mxu0 %v492_v50  ;;  %v179_v32 = vpack.c.b16 %v176_v29, %v176_v29  ;;  %v175_v33 = vsel %vm174_vm4, %v171_v31, %v168_v27  ;;  %463 = vmatmul.mubr.msk.bf16.vlgmr.msra.gmra.mrb[0].mxu1 %vm296_vm5, %v180_v30 }
  0x47   :  { %v178_v34 = vpack.c.b16 %v175_v33, %v175_v33 }
  0x48   :  { %336 = vmatprep.mubr.bf16.mxu0 %v179_v32 }
  0x49   :  { %337 = vmatmul.mubr.bf16.vlgmr.msra.gmra.mrb[0].mxu0 %v178_v34 }
 0x119   :  { %v378_v35 = vpop.f32.mrb[0].mxu1 }
 0x11a   :  { %v464_v36 = vpop.f32.mrb[1].mxu1 }
 0x11b   :  { %v381_v37 = vpop.f32.mrb[2].mxu1 }
 0x11c   :  { %v446_v38 = vpop.f32.mrb[0].mxu0  ;;  %v465_v39 = vpop.f32.mrb[3].mxu1 }
 0x11d   :  { %v447_v40 = vpop.f32.mrb[1].mxu0 }
 0x11e   :  { %v448_v42 = vadd.f32 %v447_v40, %v446_v38  ;;  %v449_v43 = vpop.f32.mrb[2].mxu0 }
 0x11f   :  { %v450_v44 = vpop.f32.mrb[3].mxu0 }
 0x120   :  { %v339_v45 = vadd.f32 %v448_v42, %v409_v41 }
 0x122   :  { %v379_v46 = vadd.f32 %v378_v35, %v339_v45 }
 0x124   :  { %v384_v47 = vmul.f32 %v379_v46, %v379_v46 }
 0x126   :  { %v386_v48 = vsel %vm385_vm6, %v384_v47, 0.0 }
 0x127   :  { %387 = vadd.xlane.f32.xlu0 %v386_v48 }
 0x1b4   :  { %v388_v49 = vpop.xlane.xlu0 %387 }
 0x1b5   :  { %v389_v50 = vadd.f32 1e-12, %v388_v49 }
 0x1b7   :  { %496 = vrsqrt.f32 %v389_v50 }
 0x1c1   :  { %v497_v51 = vpop.eup %496 }
 0x1c2   :  { %v391_v52 = vmul.f32 %v497_v51, %v379_v46 }
 0x1c4   :  { %392 = vst [vmem:[#allocation7] sm:$0x3] %v391_v52 }
 0x1c5   :  { %553 = shalt.err (!%p550_p6)
}
 0x1c6   :  { %s554_s17 = scalar_lea.hbm %s648_s3, 32 }
 0x1c7   :  { %p555_p7 = scmp.ne.s32.totalorder %s648_s3, %s554_s17  ;;  %p558_p8 = scmp.lt.u32.totalorder %s554_s17, %s648_s3 }
 0x1c9   :  { %p560_p9 = pnand %p558_p8, %p555_p7 }
 0x1cb   :  { %563 = shalt.err (!%p560_p9)
}
 0x1cc   :  { %402 = dma.vmem_to_hbm [thread:$0]  %s400_s14, 32, %s648_s3, [#allocation4]  }
 0x1cd   :  { %568 = dma.done.wait [#allocation4], 32  }
 0x1ce   :  { %569 = vsyncadd [#allocation4], 4294967264 }
 0x1cf   :  { %406 = vsyncpa [#allocation3], 1 }
 0x1d0   :  { %407 = vsyncpa [#allocation6], 1 }
 0x1d1   :  { %408 = vsyncpa [#allocation4], 1 }

</bundles_post_ra>
